<compile_context>
chip_gen: v5e
topology: v5e:2x2
jax: 0.10.0
libtpu: 0.0.40
codegen_flags: <defaults>
</compile_context>

<pallas_src>
import math

import jax
import jax.numpy as jnp
from jax.experimental import pallas as pl
from jax.experimental.pallas import tpu as pltpu


def actnorm_kernel(x_ref, scale_ref, mu_ref, z_ref):
    # x_ref/z_ref: (TN, TW) activation tile in native dtype.
    # scale_ref/mu_ref: (1, TW) resident f32 parameter rows (broadcast over rows).
    x = x_ref[...].astype(jnp.float32)
    z_ref[...] = (x * scale_ref[...] + mu_ref[...]).astype(z_ref.dtype)


def _round_up(a, b):
    return ((a + b - 1) // b) * b


def actnorm_forward(x, mu, log_sigma):
    """ActNorm forward.

    x: (..., D) array (any float dtype); mu, log_sigma: (D,) parameters.
    Returns (z with x's shape/dtype, log_det scalar) — matches the PyTorch module.
    """
    orig_shape = x.shape
    D = orig_shape[-1]
    x2 = x.reshape(-1, D)                       # native dtype, free reshape
    N = x2.shape[0]

    # O(D) parameter-only glue stays in plain JAX (not the hot path).
    scale = jnp.exp(log_sigma.astype(jnp.float32)).reshape(1, D)
    mu2 = mu.astype(jnp.float32).reshape(1, D)
    log_det = jnp.sum(log_sigma.astype(jnp.float32))

    # Lane-dense packing: fold k consecutive rows into one so the minor dim is a
    # 128-multiple (row-major reshape => layout no-op). Parameter tiling is O(D).
    k = 128 // math.gcd(D, 128)
    if k > 1 and N % k == 0:
        M, W = N // k, k * D
        x2 = x2.reshape(M, W)
        scale_w = jnp.tile(scale, (1, k))
        mu_w = jnp.tile(mu2, (1, k))
    else:
        # Fallback: keep D as-is (masked stores if D % 128 != 0).
        M, W = N, D
        scale_w, mu_w = scale, mu2

    itemsize = jnp.dtype(x.dtype).itemsize

    # Column tile: only tile the feature axis when it is wide and 128-aligned.
    if W % 128 == 0 and W > 2048:
        tw = 2048
    else:
        tw = W

    # Row tile: keep the double-buffered x+z footprint (4 tiles) <= ~24 MiB so
    # full depth-2 pipelining fits even on v7x's 64 MiB VMEM.
    tile_budget = 6 * 1024 * 1024                       # bytes per x (or z) tile
    tn = tile_budget // max(1, tw * itemsize)
    tn = max(8, min(2048, (tn // 8) * 8))
    tn = min(tn, _round_up(M, 8))

    grid = (pl.cdiv(M, tn), pl.cdiv(W, tw))             # partial last blocks OK

    z = pl.pallas_call(
        actnorm_kernel,
        out_shape=jax.ShapeDtypeStruct((M, W), x.dtype),
        grid=grid,
        in_specs=[
            pl.BlockSpec((tn, tw), lambda i, j: (i, j)),   # x tile, pipelined
            pl.BlockSpec((1, tw), lambda i, j: (0, j)),    # scale row, resident
            pl.BlockSpec((1, tw), lambda i, j: (0, j)),    # mu row, resident
        ],
        out_specs=pl.BlockSpec((tn, tw), lambda i, j: (i, j)),
        compiler_params=pltpu.CompilerParams(
            dimension_semantics=("parallel", "parallel"),
            vmem_limit_bytes=40 * 1024 * 1024,
        ),
    )(x2, scale_w, mu_w)

    return z.reshape(orig_shape), log_det


def actnorm_reference(x, mu, log_sigma):
    """Pure-JAX reference matching the PyTorch ActNorm.forward."""
    z = x * jnp.exp(log_sigma) + mu
    log_det = jnp.sum(log_sigma)
    return z, log_det


if __name__ == "__main__":
    key = jax.random.PRNGKey(0)
    kx, km, ks = jax.random.split(key, 3)

    N, D = 16, 32                                   # small test shapes
    x = jax.random.normal(kx, (N, D), dtype=jnp.float32)
    # The module initializes mu/log_sigma to zeros; use small random values so
    # the check is non-trivial.
    mu = 0.1 * jax.random.normal(km, (D,), dtype=jnp.float32)
    log_sigma = 0.1 * jax.random.normal(ks, (D,), dtype=jnp.float32)

    z, log_det = actnorm_forward(x, mu, log_sigma)
    jax.block_until_ready((z, log_det))

    z_ref, ld_ref = actnorm_reference(x, mu, log_sigma)
    assert z.shape == x.shape and z.dtype == x.dtype
    assert jnp.allclose(z, z_ref, atol=1e-6, rtol=1e-6)
    assert jnp.allclose(log_det, ld_ref, atol=1e-6, rtol=1e-6)

    print("KERNEL_OK")
</pallas_src>

<mosaic_0001>
module attributes {stable_mosaic.version = 11 : i64} {
  func.func @actnorm_kernel(%arg0: i32, %arg1: i32, %arg2: memref<8x128xf32, #tpu.memory_space<vmem>>, %arg3: memref<1x128xf32, #tpu.memory_space<vmem>>, %arg4: memref<1x128xf32, #tpu.memory_space<vmem>>, %arg5: memref<8x128xf32, #tpu.memory_space<vmem>>) attributes {dimension_semantics = [#tpu.dimension_semantics<parallel>, #tpu.dimension_semantics<parallel>], iteration_bounds = array<i64: 1, 1>, scalar_prefetch = 0 : i64, scratch_operands = 0 : i64, tpu.core_type = #tpu.core_type<tc>, window_params = [{transform_indices = @transform_0, window_bounds = array<i64: 8, 128>}, {transform_indices = @transform_1, window_bounds = array<i64: 1, 128>}, {transform_indices = @transform_2, window_bounds = array<i64: 1, 128>}, {transform_indices = @transform_3, window_bounds = array<i64: 8, 128>}]} {
    %c0 = arith.constant 0 : index
    %c0_0 = arith.constant 0 : index
    %0 = vector.load %arg2[%c0, %c0_0] : memref<8x128xf32, #tpu.memory_space<vmem>>, vector<8x128xf32>
    %c0_1 = arith.constant 0 : index
    %c0_2 = arith.constant 0 : index
    %1 = vector.load %arg3[%c0_1, %c0_2] : memref<1x128xf32, #tpu.memory_space<vmem>>, vector<1x128xf32>
    %2 = vector.broadcast %1 : vector<1x128xf32> to vector<8x128xf32>
    %3 = arith.mulf %0, %2 : vector<8x128xf32>
    %c0_3 = arith.constant 0 : index
    %c0_4 = arith.constant 0 : index
    %4 = vector.load %arg4[%c0_3, %c0_4] : memref<1x128xf32, #tpu.memory_space<vmem>>, vector<1x128xf32>
    %5 = vector.broadcast %4 : vector<1x128xf32> to vector<8x128xf32>
    %6 = arith.addf %3, %5 : vector<8x128xf32>
    %c0_5 = arith.constant 0 : index
    %c0_6 = arith.constant 0 : index
    %7 = vector.load %arg5[%c0_5, %c0_6] : memref<8x128xf32, #tpu.memory_space<vmem>>, vector<8x128xf32>
    tpu.vector_store %arg5[%c0_5, %c0_6], %6 {strides = array<i32>} : memref<8x128xf32, #tpu.memory_space<vmem>>, vector<8x128xf32>,
    return
  }
  func.func @transform_0(%arg0: i32, %arg1: i32) -> (i32, i32) {
    %c0_i32 = arith.constant 0 : i32
    return %arg0, %arg1 : i32, i32
  }
  func.func @transform_1(%arg0: i32, %arg1: i32) -> (i32, i32) {
    %c0_i32 = arith.constant 0 : i32
    %c0_i32_0 = arith.constant 0 : i32
    return %c0_i32, %arg1 : i32, i32
  }
  func.func @transform_2(%arg0: i32, %arg1: i32) -> (i32, i32) {
    %c0_i32 = arith.constant 0 : i32
    %c0_i32_0 = arith.constant 0 : i32
    return %c0_i32, %arg1 : i32, i32
  }
  func.func @transform_3(%arg0: i32, %arg1: i32) -> (i32, i32) {
    %c0_i32 = arith.constant 0 : i32
    return %arg0, %arg1 : i32, i32
  }
}

</mosaic_0001>

<bundles_post_ra>
// kernel: tpu_custom_call.1
= control target key start
LH: loop header
LB: loop body
LE: loop exit
PB: predicated region body
PF: predicated region fallthrough
CT: control target
= control target key end

     0   :  { %8 = vsyncpa [#allocation3], 0  ;;  %s199_s0 = inlined_call_operand.hbm [shape: f32[4,128], index: 0, kind: input, shape index: {}]   ;;  %s200_s1 = inlined_call_operand.hbm [shape: f32[1,128], index: 1, kind: input, shape index: {}]   ;;  %s201_s2 = inlined_call_operand.vmem [shape: f32[1,128], index: 2, kind: input, shape index: {}]   ;;  %s202_s3 = inlined_call_operand.hbm [shape: f32[4,128], index: 3, kind: output, shape index: {}]  }
   0x1   :  { %9 = vsyncpa [#allocation6], 0 }
   0x2   :  { %10 = vsyncpa [#allocation4], 0 }
   0x3   :  { %14 = vsyncadd [#allocation3], 64  ;;  %s15_s14 = sshll.u32 %s199_s0, 4  ;;  %s162_s15 = smov [#allocation2]   ;;  %s16_s14 = int_to_ptr.hbm [resolvable:$true] %s15_s14 }
   0x4   :  { %s17_s16 = sshll.u32 %s162_s15, 4  ;;  %s29_s19 = sshll.u32 %s200_s1, 4  ;;  %s18_s16 = int_to_ptr.vmem [resolvable:$true] %s17_s16  ;;  %s30_s19 = int_to_ptr.hbm [resolvable:$true] %s29_s19 }
   0x5   :  { %s163_s20 = smov 64   ;;  %s164_s21 = smov 4  }
   0x6   :  { %23 = dma.hbm_to_vmem [thread:$0]  %s16_s14, 64, %s18_s16, [#allocation3], %s163_s20, %s163_s20, %s164_s21  }
   0x7   :  { %s165_s22 = smov [#allocation5]  }
   0x8   :  { %s31_s23 = sshll.u32 %s165_s22, 4  ;;  %s32_s23 = int_to_ptr.vmem [resolvable:$true] %s31_s23 }
   0x9   :  { %34 = dma.hbm_to_vmem [thread:$0]  %s30_s19, 16, %s32_s23, [#allocation6]  }
   0xa   :  { %156 = dma.done.wait [#allocation3], 128  }
   0xb   :  { %157 = vsyncadd [#allocation3], 4294967168 }
   0xc   :  { %158 = dma.done.wait [#allocation6], 16  }
   0xd   :  { %159 = vsyncadd [#allocation6], 4294967280  ;;  %v45_v0 = vld [vmem:[#allocation2] sm:$0xff]  ;;  %v82_v1 = vld [vmem:[#allocation5] ss:$0 sm:$0xff] }
   0xe   :  { %v83_v2 = vld [vmem:[%s201_s2] ss:$0 sm:$0xff]  ;;  %v50_v3 = vmul.f32 %v82_v1, %v45_v0 }
  0x10   :  { %v55_v4 = vadd.f32 %v83_v2, %v50_v3 }
  0x12   :  { %56 = vst [vmem:[#allocation7] sm:$0xff] %v55_v4 }
  0x13   :  { %60 = vsyncadd [#allocation4], 64  ;;  %s63_s26 = sshll.u32 %s202_s3, 4  ;;  %s166_s27 = smov [#allocation7]   ;;  %s64_s26 = int_to_ptr.hbm [resolvable:$true] %s63_s26 }
  0x14   :  { %s61_s28 = sshll.u32 %s166_s27, 4  ;;  %s62_s28 = int_to_ptr.vmem [resolvable:$true] %s61_s28 }
  0x15   :  { %69 = dma.vmem_to_hbm [thread:$0]  %s62_s28, 64, %s64_s26, [#allocation4], %s163_s20, %s163_s20, %s164_s21  }
  0x16   :  { %160 = dma.done.wait [#allocation4], 128  }
  0x17   :  { %161 = vsyncadd [#allocation4], 4294967168 }
  0x18   :  { %74 = vsyncpa [#allocation3], 1 }
  0x19   :  { %75 = vsyncpa [#allocation6], 1 }
  0x1a   :  { %76 = vsyncpa [#allocation4], 1 }

</bundles_post_ra>
